<compile_context>
chip_gen: v7x
topology: tpu7x:2x2x1
jax: 0.10.0
libtpu: 0.0.40
codegen_flags: <defaults>
</compile_context>

<pallas_src>
import functools

import jax
import jax.numpy as jnp
from jax.experimental import pallas as pl
from jax.experimental.pallas import tpu as pltpu

_LANE = 128
_MiB = 1024 * 1024


def _vmem_capacity_bytes():
    """Physical VMEM of this generation (fallback 64 MiB = v7x-safe)."""
    try:
        return int(pltpu.get_tpu_info().vmem_capacity_bytes)
    except Exception:
        return 64 * _MiB


def _divisor_tiles(n, candidates):
    tiles = [c for c in candidates if c <= n and n % c == 0]
    return tiles if tiles else [n]


# --------------------------------------------------------------------------
# VMEM cost models (blocks double-buffered by the Pallas pipeline).
# --------------------------------------------------------------------------
def _proj_vmem_bytes(tm, d_model, h, dk, dv, itemsize):
    dbuf = 2
    x_blocks = 3 * dbuf * tm * d_model * itemsize
    w_res = dbuf * (d_model + 1) * h * (2 * dk + dv) * itemsize
    out_blocks = dbuf * tm * h * (2 * dk + dv) * itemsize
    temps = 3 * tm * h * max(dk, dv) * 4          # f32 matmul results
    return x_blocks + w_res + out_blocks + temps


def _attn_vmem_bytes(tq, tk, dk, dv, d_model, itemsize):
    dbuf = 2
    qkv = dbuf * (tq * dk + tk * (dk + dv)) * itemsize
    w_blocks = dbuf * (dv + 1) * d_model * itemsize          # per-head wo + bo
    out_block = dbuf * tq * d_model * itemsize
    scratch = (2 * tq * _LANE + tq * dv + tq * d_model) * 4  # m, l, acc, o_acc
    temps = 3 * tq * tk * 4                                  # s, p (+ headroom)
    return qkv + w_blocks + out_block + scratch + temps


def _pick_proj_tile(S, d_model, h, dk, dv, itemsize, budget):
    tiles = _divisor_tiles(S, (1024, 512, 256, 128, 64, 32, 16, 8))
    for tm in tiles:
        if _proj_vmem_bytes(tm, d_model, h, dk, dv, itemsize) <= budget:
            return tm
    return tiles[-1]


def _pick_attn_tiles(S, dk, dv, d_model, itemsize, budget):
    tiles = _divisor_tiles(S, (512, 256, 128, 64, 32, 16, 8))
    fits = lambda tq, tk: _attn_vmem_bytes(tq, tk, dk, dv, d_model, itemsize) <= budget
    # Pass 1: keep TK >= 256 when possible (fills the 256-wide MXU on v6e/v7x)
    # while maximizing TQ (fewer K/V HBM re-reads, the v5e priority).
    # Pass 2: otherwise any largest fitting pair.
    for tk_floor in (min(256, tiles[0]), tiles[-1]):
        for tq in tiles:
            for tk in tiles:
                if tk >= tk_floor and fits(tq, tk):
                    return tq, tk
    return tiles[-1], tiles[-1]


# --------------------------------------------------------------------------
# Kernel 1: fused Q / K / V projections with head-major output.
# Blocks: x (1, TM, d_model), weights resident, out (1, h, TM, d).
# --------------------------------------------------------------------------
def _qkv_proj_kernel(xq_ref, xk_ref, xv_ref,
                     wq_ref, bq_ref, wk_ref, bk_ref, wv_ref, bv_ref,
                     q_out, k_out, v_out, *, h, dk, dv, scale):
    xq = xq_ref[0]                                  # (TM, d_model)
    xk = xk_ref[0]
    xv = xv_ref[0]
    # One wide, lane-dense MXU matmul per tensor, f32 accumulation.
    q = jnp.dot(xq, wq_ref[...], preferred_element_type=jnp.float32) + bq_ref[...]
    k = jnp.dot(xk, wk_ref[...], preferred_element_type=jnp.float32) + bk_ref[...]
    v = jnp.dot(xv, wv_ref[...], preferred_element_type=jnp.float32) + bv_ref[...]
    q = q * scale                                   # fold 1/sqrt(dk) into Q once
    # Split heads in VMEM and write head-major: the relayout stays on-chip
    # instead of costing ~6 extra HBM passes via an XLA transpose.
    for hh in range(h):
        q_out[0, hh] = q[:, hh * dk:(hh + 1) * dk].astype(q_out.dtype)
        k_out[0, hh] = k[:, hh * dk:(hh + 1) * dk].astype(k_out.dtype)
        v_out[0, hh] = v[:, hh * dv:(hh + 1) * dv].astype(v_out.dtype)


# --------------------------------------------------------------------------
# Kernel 2: per-head flash attention + fused, head-accumulated output proj.
# grid = (B, q_tiles, h, kv_tiles); out block (1, TQ, d_model) revisited
# across (h, kv) -> accumulator pattern.
# --------------------------------------------------------------------------
def _flash_attn_kernel(q_ref, k_ref, v_ref, wo_ref, bo_ref, o_ref,
                       m_sc, l_sc, acc_sc, oacc_sc):
    hh = pl.program_id(2)
    ki = pl.program_id(3)
    n_h = pl.num_programs(2)
    n_k = pl.num_programs(3)

    @pl.when(ki == 0)
    def _init():
        m_sc[...] = jnp.full(m_sc.shape, -jnp.inf, m_sc.dtype)
        l_sc[...] = jnp.zeros(l_sc.shape, l_sc.dtype)
        acc_sc[...] = jnp.zeros(acc_sc.shape, acc_sc.dtype)

    q = q_ref[0, 0]                                 # (TQ, dk), pre-scaled
    k = k_ref[0, 0]                                 # (TK, dk)
    v = v_ref[0, 0]                                 # (TK, dv)

    # q @ k^T expressed directly as a dot_general (MXU, no explicit transpose).
    s = jax.lax.dot_general(q, k, (((1,), (1,)), ((), ())),
                            preferred_element_type=jnp.float32)    # (TQ, TK)

    m_prev = m_sc[...]                              # (TQ, 128) lane-broadcast f32
    l_prev = l_sc[...]
    m_new = jnp.maximum(m_prev, jnp.max(s, axis=-1, keepdims=True))
    alpha = jnp.exp(m_prev - m_new)                 # f32 softmax statistics
    p = jnp.exp(s - m_new[:, 0:1])                  # (TQ, TK) f32
    l_sc[...] = alpha * l_prev + jnp.sum(p, axis=-1, keepdims=True)
    acc_sc[...] = alpha[:, 0:1] * acc_sc[...] + jnp.dot(
        p.astype(v.dtype), v, preferred_element_type=jnp.float32)  # (TQ, dv)
    m_sc[...] = m_new

    @pl.when(ki == n_k - 1)
    def _finalize():
        # Exact reciprocal (correctness-reviewed); approx=True is available for
        # bf16 outputs where the EUP fast path is preferable.
        inv_l = pl.reciprocal(l_sc[...], approx=False)[:, 0:1]
        attn = (acc_sc[...] * inv_l).astype(wo_ref.dtype)          # (TQ, dv)
        # Per-head slice of the output projection; accumulated over heads in an
        # f32 scratch -> no (h, TQ, d_model) transient.
        contrib = jnp.dot(attn, wo_ref[0],
                          preferred_element_type=jnp.float32)      # (TQ, d_model)

        @pl.when(hh == 0)
        def _first():
            oacc_sc[...] = contrib + bo_ref[...]

        @pl.when(hh > 0)
        def _rest():
            oacc_sc[...] = oacc_sc[...] + contrib

        @pl.when(hh == n_h - 1)
        def _write():
            o_ref[0] = oacc_sc[...].astype(o_ref.dtype)


def multi_head_attention(query, key, value, params, *, h, dk, dv, mask=None):
    if mask is not None:
        # TODO(synk): the optional attention mask of the PyTorch forward is not
        # wired in; only the default mask=None path is implemented.
        raise NotImplementedError("mask is not supported by this Pallas kernel")

    B, S, d_model = query.shape
    wq, bq, wk, bk, wv, bv, wo, bo = params
    dtype = query.dtype
    itemsize = jnp.dtype(dtype).itemsize

    cap = _vmem_capacity_bytes()
    budget = int(cap * 0.6)               # generation-aware block/scratch budget

    # ---- Kernel 1: fused Q/K/V projections, head-major outputs -------------
    TM = _pick_proj_tile(S, d_model, h, dk, dv, itemsize, budget)
    proj_vmem = int(min(cap, 2 * _proj_vmem_bytes(TM, d_model, h, dk, dv, itemsize)
                        + 16 * _MiB))
    # TODO(synk): on v7x with very large d_model the resident W_q/W_k/W_v exceed
    # 64 MiB; add an output-feature grid axis for the projection weights there.

    def full_spec(arr):
        nd = arr.ndim
        return pl.BlockSpec(arr.shape, lambda b, si, _n=nd: (0,) * _n)

    row_in = pl.BlockSpec((1, TM, d_model), lambda b, si: (b, si, 0))
    head_out = lambda d: pl.BlockSpec((1, h, TM, d), lambda b, si: (b, 0, si, 0))

    qh, kh, vh = pl.pallas_call(
        functools.partial(_qkv_proj_kernel, h=h, dk=dk, dv=dv,
                          scale=1.0 / float(dk) ** 0.5),
        out_shape=(jax.ShapeDtypeStruct((B, h, S, dk), dtype),
                   jax.ShapeDtypeStruct((B, h, S, dk), dtype),
                   jax.ShapeDtypeStruct((B, h, S, dv), dtype)),
        grid_spec=pltpu.PrefetchScalarGridSpec(
            num_scalar_prefetch=0,
            grid=(B, S // TM),
            in_specs=[row_in, row_in, row_in,
                      full_spec(wq), full_spec(bq), full_spec(wk), full_spec(bk),
                      full_spec(wv), full_spec(bv)],
            out_specs=[head_out(dk), head_out(dk), head_out(dv)],
        ),
        compiler_params=pltpu.CompilerParams(
            dimension_semantics=("parallel", "parallel"),
            vmem_limit_bytes=proj_vmem),
    )(query, key, value, wq, bq, wk, bk, wv, bv)

    # ---- Kernel 2: per-head flash attention + fused output projection ------
    TQ, TK = _pick_attn_tiles(S, dk, dv, d_model, itemsize, budget)
    attn_vmem = int(min(cap, 2 * _attn_vmem_bytes(TQ, TK, dk, dv, d_model, itemsize)
                        + 16 * _MiB))

    wo_h = wo.reshape(h, dv, d_model)     # pure reshape, no data movement
    # TODO(synk): for d_model large enough that (TQ, d_model) blocks strain v7x
    # VMEM, split the output projection into its own GEMM kernel.

    out = pl.pallas_call(
        _flash_attn_kernel,
        out_shape=jax.ShapeDtypeStruct((B, S, d_model), dtype),
        grid_spec=pltpu.PrefetchScalarGridSpec(
            num_scalar_prefetch=0,
            grid=(B, S // TQ, h, S // TK),
            in_specs=[
                pl.BlockSpec((1, 1, TQ, dk), lambda b, qi, hh, ki: (b, hh, qi, 0)),
                pl.BlockSpec((1, 1, TK, dk), lambda b, qi, hh, ki: (b, hh, ki, 0)),
                pl.BlockSpec((1, 1, TK, dv), lambda b, qi, hh, ki: (b, hh, ki, 0)),
                pl.BlockSpec((1, dv, d_model), lambda b, qi, hh, ki: (hh, 0, 0)),
                pl.BlockSpec((1, d_model), lambda b, qi, hh, ki: (0, 0)),
            ],
            out_specs=pl.BlockSpec((1, TQ, d_model),
                                   lambda b, qi, hh, ki: (b, qi, 0)),
            scratch_shapes=[pltpu.VMEM((TQ, _LANE), jnp.float32),    # m (lane-dense)
                            pltpu.VMEM((TQ, _LANE), jnp.float32),    # l (lane-dense)
                            pltpu.VMEM((TQ, dv), jnp.float32),       # per-head acc
                            pltpu.VMEM((TQ, d_model), jnp.float32)], # wo accumulation
        ),
        compiler_params=pltpu.CompilerParams(
            dimension_semantics=("parallel", "parallel", "arbitrary", "arbitrary"),
            vmem_limit_bytes=attn_vmem),
    )(qh, kh, vh, wo_h, bo)
    return out


def _reference(query, key, value, params, *, h, dk, dv):
    """Pure-JAX reference mirroring the PyTorch module (mask=None path)."""
    wq, bq, wk, bk, wv, bv, wo, bo = params
    B, S, d_model = query.shape
    Q = query @ wq + bq
    K = key @ wk + bk
    V = value @ wv + bv
    Q = Q.reshape(B, S, h, dk).transpose(0, 2, 1, 3)
    K = K.reshape(B, S, h, dk).transpose(0, 2, 1, 3)
    V = V.reshape(B, S, h, dv).transpose(0, 2, 1, 3)
    scores = jnp.einsum("bhqd,bhkd->bhqk", Q, K) / (dk ** 0.5)
    attn = jax.nn.softmax(scores, axis=-1)
    vals = jnp.einsum("bhqk,bhkd->bhqd", attn, V)
    vals = vals.transpose(0, 2, 1, 3).reshape(B, S, h * dv)
    return vals @ wo + bo


if __name__ == "__main__":
    # Small shapes consistent with the module's forward.
    B, S = 2, 8
    h, dk, dv, d_model = 4, 8, 8, 32

    key0 = jax.random.PRNGKey(0)
    keys = jax.random.split(key0, 12)

    def linear_params(kw, kb, fan_in, fan_out):
        bound = 1.0 / (fan_in ** 0.5)
        w = jax.random.uniform(kw, (fan_in, fan_out), jnp.float32, -bound, bound)
        b = jax.random.uniform(kb, (1, fan_out), jnp.float32, -bound, bound)
        return w, b

    wq, bq = linear_params(keys[0], keys[1], d_model, h * dk)
    wk, bk = linear_params(keys[2], keys[3], d_model, h * dk)
    wv, bv = linear_params(keys[4], keys[5], d_model, h * dv)
    wo, bo = linear_params(keys[6], keys[7], h * dv, d_model)
    params = (wq, bq, wk, bk, wv, bv, wo, bo)

    query = jax.random.normal(keys[8], (B, S, d_model), jnp.float32)
    kkey = jax.random.normal(keys[9], (B, S, d_model), jnp.float32)
    value = jax.random.normal(keys[10], (B, S, d_model), jnp.float32)

    out = multi_head_attention(query, kkey, value, params, h=h, dk=dk, dv=dv)
    out = jax.block_until_ready(out)

    ref = _reference(query, kkey, value, params, h=h, dk=dk, dv=dv)
    assert out.shape == (B, S, d_model)
    assert jnp.allclose(out, ref, atol=2e-3, rtol=2e-3), "mismatch vs reference"

    print("KERNEL_OK")
</pallas_src>

<mosaic_0001>
module attributes {stable_mosaic.version = 11 : i64} {
  func.func @_qkv_proj_kernel(%arg0: i32, %arg1: i32, %arg2: memref<1x8x32xf32, #tpu.memory_space<vmem>>, %arg3: memref<1x8x32xf32, #tpu.memory_space<vmem>>, %arg4: memref<1x8x32xf32, #tpu.memory_space<vmem>>, %arg5: memref<32x32xf32, #tpu.memory_space<vmem>>, %arg6: memref<1x32xf32, #tpu.memory_space<vmem>>, %arg7: memref<32x32xf32, #tpu.memory_space<vmem>>, %arg8: memref<1x32xf32, #tpu.memory_space<vmem>>, %arg9: memref<32x32xf32, #tpu.memory_space<vmem>>, %arg10: memref<1x32xf32, #tpu.memory_space<vmem>>, %arg11: memref<1x4x8x8xf32, #tpu.memory_space<vmem>>, %arg12: memref<1x4x8x8xf32, #tpu.memory_space<vmem>>, %arg13: memref<1x4x8x8xf32, #tpu.memory_space<vmem>>) attributes {dimension_semantics = [#tpu.dimension_semantics<parallel>, #tpu.dimension_semantics<parallel>], iteration_bounds = array<i64: 2, 1>, scalar_prefetch = 0 : i64, scratch_operands = 0 : i64, tpu.core_type = #tpu.core_type<tc>, window_params = [{transform_indices = @transform_0, window_bounds = array<i64: 1, 8, 32>}, {transform_indices = @transform_1, window_bounds = array<i64: 1, 8, 32>}, {transform_indices = @transform_2, window_bounds = array<i64: 1, 8, 32>}, {pipeline_mode = #tpu.pipeline_mode<synchronous>, transform_indices = @transform_3, window_bounds = array<i64: 32, 32>}, {pipeline_mode = #tpu.pipeline_mode<synchronous>, transform_indices = @transform_4, window_bounds = array<i64: 1, 32>}, {pipeline_mode = #tpu.pipeline_mode<synchronous>, transform_indices = @transform_5, window_bounds = array<i64: 32, 32>}, {pipeline_mode = #tpu.pipeline_mode<synchronous>, transform_indices = @transform_6, window_bounds = array<i64: 1, 32>}, {pipeline_mode = #tpu.pipeline_mode<synchronous>, transform_indices = @transform_7, window_bounds = array<i64: 32, 32>}, {pipeline_mode = #tpu.pipeline_mode<synchronous>, transform_indices = @transform_8, window_bounds = array<i64: 1, 32>}, {transform_indices = @transform_9, window_bounds = array<i64: 1, 4, 8, 8>}, {transform_indices = @transform_10, window_bounds = array<i64: 1, 4, 8, 8>}, {transform_indices = @transform_11, window_bounds = array<i64: 1, 4, 8, 8>}]} {
    %c0 = arith.constant 0 : index
    %c0_0 = arith.constant 0 : index
    %c0_1 = arith.constant 0 : index
    %0 = vector.load %arg2[%c0, %c0_0, %c0_1] : memref<1x8x32xf32, #tpu.memory_space<vmem>>, vector<1x8x32xf32>
    %1 = vector.shape_cast %0 : vector<1x8x32xf32> to vector<8x32xf32>
    %c0_2 = arith.constant 0 : index
    %c0_3 = arith.constant 0 : index
    %c0_4 = arith.constant 0 : index
    %2 = vector.load %arg3[%c0_2, %c0_3, %c0_4] : memref<1x8x32xf32, #tpu.memory_space<vmem>>, vector<1x8x32xf32>
    %3 = vector.shape_cast %2 : vector<1x8x32xf32> to vector<8x32xf32>
    %c0_5 = arith.constant 0 : index
    %c0_6 = arith.constant 0 : index
    %c0_7 = arith.constant 0 : index
    %4 = vector.load %arg4[%c0_5, %c0_6, %c0_7] : memref<1x8x32xf32, #tpu.memory_space<vmem>>, vector<1x8x32xf32>
    %5 = vector.shape_cast %4 : vector<1x8x32xf32> to vector<8x32xf32>
    %c0_8 = arith.constant 0 : index
    %c0_9 = arith.constant 0 : index
    %6 = vector.load %arg5[%c0_8, %c0_9] : memref<32x32xf32, #tpu.memory_space<vmem>>, vector<32x32xf32>
    %cst = arith.constant dense<0.000000e+00> : vector<8x32xf32>
    %7 = tpu.matmul %1, %6, %cst {dimension_numbers = #tpu.dot_dimension_numbers<[1], [0], [0], [1], [0, 0, 1, 1], [], []>} : vector<8x32xf32>, vector<32x32xf32>, vector<8x32xf32> -> vector<8x32xf32>
    %c0_10 = arith.constant 0 : index
    %c0_11 = arith.constant 0 : index
    %8 = vector.load %arg6[%c0_10, %c0_11] : memref<1x32xf32, #tpu.memory_space<vmem>>, vector<1x32xf32>
    %9 = vector.broadcast %8 : vector<1x32xf32> to vector<8x32xf32>
    %10 = arith.addf %7, %9 : vector<8x32xf32>
    %c0_12 = arith.constant 0 : index
    %c0_13 = arith.constant 0 : index
    %11 = vector.load %arg7[%c0_12, %c0_13] : memref<32x32xf32, #tpu.memory_space<vmem>>, vector<32x32xf32>
    %cst_14 = arith.constant dense<0.000000e+00> : vector<8x32xf32>
    %12 = tpu.matmul %3, %11, %cst_14 {dimension_numbers = #tpu.dot_dimension_numbers<[1], [0], [0], [1], [0, 0, 1, 1], [], []>} : vector<8x32xf32>, vector<32x32xf32>, vector<8x32xf32> -> vector<8x32xf32>
    %c0_15 = arith.constant 0 : index
    %c0_16 = arith.constant 0 : index
    %13 = vector.load %arg8[%c0_15, %c0_16] : memref<1x32xf32, #tpu.memory_space<vmem>>, vector<1x32xf32>
    %14 = vector.broadcast %13 : vector<1x32xf32> to vector<8x32xf32>
    %15 = arith.addf %12, %14 : vector<8x32xf32>
    %c0_17 = arith.constant 0 : index
    %c0_18 = arith.constant 0 : index
    %16 = vector.load %arg9[%c0_17, %c0_18] : memref<32x32xf32, #tpu.memory_space<vmem>>, vector<32x32xf32>
    %cst_19 = arith.constant dense<0.000000e+00> : vector<8x32xf32>
    %17 = tpu.matmul %5, %16, %cst_19 {dimension_numbers = #tpu.dot_dimension_numbers<[1], [0], [0], [1], [0, 0, 1, 1], [], []>} : vector<8x32xf32>, vector<32x32xf32>, vector<8x32xf32> -> vector<8x32xf32>
    %c0_20 = arith.constant 0 : index
    %c0_21 = arith.constant 0 : index
    %18 = vector.load %arg10[%c0_20, %c0_21] : memref<1x32xf32, #tpu.memory_space<vmem>>, vector<1x32xf32>
    %19 = vector.broadcast %18 : vector<1x32xf32> to vector<8x32xf32>
    %20 = arith.addf %17, %19 : vector<8x32xf32>
    %cst_22 = arith.constant 0.353553385 : f32
    %21 = vector.broadcast %cst_22 : f32 to vector<8x32xf32>
    %22 = arith.mulf %10, %21 : vector<8x32xf32>
    %23 = vector.extract_strided_slice %22 {offsets = [0, 0], sizes = [8, 8], strides = [1, 1]} : vector<8x32xf32> to vector<8x8xf32>
    %c0_23 = arith.constant 0 : index
    %c0_24 = arith.constant 0 : index
    %c0_25 = arith.constant 0 : index
    %c0_26 = arith.constant 0 : index
    %24 = vector.load %arg11[%c0_23, %c0_24, %c0_25, %c0_26] : memref<1x4x8x8xf32, #tpu.memory_space<vmem>>, vector<1x1x8x8xf32>
    %25 = vector.shape_cast %24 : vector<1x1x8x8xf32> to vector<8x8xf32>
    %26 = vector.shape_cast %23 : vector<8x8xf32> to vector<1x1x8x8xf32>
    tpu.vector_store %arg11[%c0_23, %c0_24, %c0_25, %c0_26], %26 {strides = array<i32>} : memref<1x4x8x8xf32, #tpu.memory_space<vmem>>, vector<1x1x8x8xf32>,
    %27 = vector.extract_strided_slice %15 {offsets = [0, 0], sizes = [8, 8], strides = [1, 1]} : vector<8x32xf32> to vector<8x8xf32>
    %c0_27 = arith.constant 0 : index
    %c0_28 = arith.constant 0 : index
    %c0_29 = arith.constant 0 : index
    %c0_30 = arith.constant 0 : index
    %28 = vector.load %arg12[%c0_27, %c0_28, %c0_29, %c0_30] : memref<1x4x8x8xf32, #tpu.memory_space<vmem>>, vector<1x1x8x8xf32>
    %29 = vector.shape_cast %28 : vector<1x1x8x8xf32> to vector<8x8xf32>
    %30 = vector.shape_cast %27 : vector<8x8xf32> to vector<1x1x8x8xf32>
    tpu.vector_store %arg12[%c0_27, %c0_28, %c0_29, %c0_30], %30 {strides = array<i32>} : memref<1x4x8x8xf32, #tpu.memory_space<vmem>>, vector<1x1x8x8xf32>,
    %31 = vector.extract_strided_slice %20 {offsets = [0, 0], sizes = [8, 8], strides = [1, 1]} : vector<8x32xf32> to vector<8x8xf32>
    %c0_31 = arith.constant 0 : index
    %c0_32 = arith.constant 0 : index
    %c0_33 = arith.constant 0 : index
    %c0_34 = arith.constant 0 : index
    %32 = vector.load %arg13[%c0_31, %c0_32, %c0_33, %c0_34] : memref<1x4x8x8xf32, #tpu.memory_space<vmem>>, vector<1x1x8x8xf32>
    %33 = vector.shape_cast %32 : vector<1x1x8x8xf32> to vector<8x8xf32>
    %34 = vector.shape_cast %31 : vector<8x8xf32> to vector<1x1x8x8xf32>
    tpu.vector_store %arg13[%c0_31, %c0_32, %c0_33, %c0_34], %34 {strides = array<i32>} : memref<1x4x8x8xf32, #tpu.memory_space<vmem>>, vector<1x1x8x8xf32>,
    %35 = vector.extract_strided_slice %22 {offsets = [0, 8], sizes = [8, 8], strides = [1, 1]} : vector<8x32xf32> to vector<8x8xf32>
    %c0_35 = arith.constant 0 : index
    %c1 = arith.constant 1 : index
    %c0_36 = arith.constant 0 : index
    %c0_37 = arith.constant 0 : index
    %36 = vector.load %arg11[%c0_35, %c1, %c0_36, %c0_37] : memref<1x4x8x8xf32, #tpu.memory_space<vmem>>, vector<1x1x8x8xf32>
    %37 = vector.shape_cast %36 : vector<1x1x8x8xf32> to vector<8x8xf32>
    %38 = vector.shape_cast %35 : vector<8x8xf32> to vector<1x1x8x8xf32>
    tpu.vector_store %arg11[%c0_35, %c1, %c0_36, %c0_37], %38 {strides = array<i32>} : memref<1x4x8x8xf32, #tpu.memory_space<vmem>>, vector<1x1x8x8xf32>,
    %39 = vector.extract_strided_slice %15 {offsets = [0, 8], sizes = [8, 8], strides = [1, 1]} : vector<8x32xf32> to vector<8x8xf32>
    %c0_38 = arith.constant 0 : index
    %c1_39 = arith.constant 1 : index
    %c0_40 = arith.constant 0 : index
    %c0_41 = arith.constant 0 : index
    %40 = vector.load %arg12[%c0_38, %c1_39, %c0_40, %c0_41] : memref<1x4x8x8xf32, #tpu.memory_space<vmem>>, vector<1x1x8x8xf32>
    %41 = vector.shape_cast %40 : vector<1x1x8x8xf32> to vector<8x8xf32>
    %42 = vector.shape_cast %39 : vector<8x8xf32> to vector<1x1x8x8xf32>
    tpu.vector_store %arg12[%c0_38, %c1_39, %c0_40, %c0_41], %42 {strides = array<i32>} : memref<1x4x8x8xf32, #tpu.memory_space<vmem>>, vector<1x1x8x8xf32>,
    %43 = vector.extract_strided_slice %20 {offsets = [0, 8], sizes = [8, 8], strides = [1, 1]} : vector<8x32xf32> to vector<8x8xf32>
    %c0_42 = arith.constant 0 : index
    %c1_43 = arith.constant 1 : index
    %c0_44 = arith.constant 0 : index
    %c0_45 = arith.constant 0 : index
    %44 = vector.load %arg13[%c0_42, %c1_43, %c0_44, %c0_45] : memref<1x4x8x8xf32, #tpu.memory_space<vmem>>, vector<1x1x8x8xf32>
    %45 = vector.shape_cast %44 : vector<1x1x8x8xf32> to vector<8x8xf32>
    %46 = vector.shape_cast %43 : vector<8x8xf32> to vector<1x1x8x8xf32>
    tpu.vector_store %arg13[%c0_42, %c1_43, %c0_44, %c0_45], %46 {strides = array<i32>} : memref<1x4x8x8xf32, #tpu.memory_space<vmem>>, vector<1x1x8x8xf32>,
    %47 = vector.extract_strided_slice %22 {offsets = [0, 16], sizes = [8, 8], strides = [1, 1]} : vector<8x32xf32> to vector<8x8xf32>
    %c0_46 = arith.constant 0 : index
    %c2 = arith.constant 2 : index
    %c0_47 = arith.constant 0 : index
    %c0_48 = arith.constant 0 : index
    %48 = vector.load %arg11[%c0_46, %c2, %c0_47, %c0_48] : memref<1x4x8x8xf32, #tpu.memory_space<vmem>>, vector<1x1x8x8xf32>
    %49 = vector.shape_cast %48 : vector<1x1x8x8xf32> to vector<8x8xf32>
    %50 = vector.shape_cast %47 : vector<8x8xf32> to vector<1x1x8x8xf32>
    tpu.vector_store %arg11[%c0_46, %c2, %c0_47, %c0_48], %50 {strides = array<i32>} : memref<1x4x8x8xf32, #tpu.memory_space<vmem>>, vector<1x1x8x8xf32>,
    %51 = vector.extract_strided_slice %15 {offsets = [0, 16], sizes = [8, 8], strides = [1, 1]} : vector<8x32xf32> to vector<8x8xf32>
    %c0_49 = arith.constant 0 : index
    %c2_50 = arith.constant 2 : index
    %c0_51 = arith.constant 0 : index
    %c0_52 = arith.constant 0 : index
    %52 = vector.load %arg12[%c0_49, %c2_50, %c0_51, %c0_52] : memref<1x4x8x8xf32, #tpu.memory_space<vmem>>, vector<1x1x8x8xf32>
    %53 = vector.shape_cast %52 : vector<1x1x8x8xf32> to vector<8x8xf32>
    %54 = vector.shape_cast %51 : vector<8x8xf32> to vector<1x1x8x8xf32>
    tpu.vector_store %arg12[%c0_49, %c2_50, %c0_51, %c0_52], %54 {strides = array<i32>} : memref<1x4x8x8xf32, #tpu.memory_space<vmem>>, vector<1x1x8x8xf32>,
    %55 = vector.extract_strided_slice %20 {offsets = [0, 16], sizes = [8, 8], strides = [1, 1]} : vector<8x32xf32> to vector<8x8xf32>
    %c0_53 = arith.constant 0 : index
    %c2_54 = arith.constant 2 : index
    %c0_55 = arith.constant 0 : index
    %c0_56 = arith.constant 0 : index
    %56 = vector.load %arg13[%c0_53, %c2_54, %c0_55, %c0_56] : memref<1x4x8x8xf32, #tpu.memory_space<vmem>>, vector<1x1x8x8xf32>
    %57 = vector.shape_cast %56 : vector<1x1x8x8xf32> to vector<8x8xf32>
    %58 = vector.shape_cast %55 : vector<8x8xf32> to vector<1x1x8x8xf32>
    tpu.vector_store %arg13[%c0_53, %c2_54, %c0_55, %c0_56], %58 {strides = array<i32>} : memref<1x4x8x8xf32, #tpu.memory_space<vmem>>, vector<1x1x8x8xf32>,
    %59 = vector.extract_strided_slice %22 {offsets = [0, 24], sizes = [8, 8], strides = [1, 1]} : vector<8x32xf32> to vector<8x8xf32>
    %c0_57 = arith.constant 0 : index
    %c3 = arith.constant 3 : index
    %c0_58 = arith.constant 0 : index
    %c0_59 = arith.constant 0 : index
    %60 = vector.load %arg11[%c0_57, %c3, %c0_58, %c0_59] : memref<1x4x8x8xf32, #tpu.memory_space<vmem>>, vector<1x1x8x8xf32>
    %61 = vector.shape_cast %60 : vector<1x1x8x8xf32> to vector<8x8xf32>
    %62 = vector.shape_cast %59 : vector<8x8xf32> to vector<1x1x8x8xf32>
    tpu.vector_store %arg11[%c0_57, %c3, %c0_58, %c0_59], %62 {strides = array<i32>} : memref<1x4x8x8xf32, #tpu.memory_space<vmem>>, vector<1x1x8x8xf32>,
    %63 = vector.extract_strided_slice %15 {offsets = [0, 24], sizes = [8, 8], strides = [1, 1]} : vector<8x32xf32> to vector<8x8xf32>
    %c0_60 = arith.constant 0 : index
    %c3_61 = arith.constant 3 : index
    %c0_62 = arith.constant 0 : index
    %c0_63 = arith.constant 0 : index
    %64 = vector.load %arg12[%c0_60, %c3_61, %c0_62, %c0_63] : memref<1x4x8x8xf32, #tpu.memory_space<vmem>>, vector<1x1x8x8xf32>
    %65 = vector.shape_cast %64 : vector<1x1x8x8xf32> to vector<8x8xf32>
    %66 = vector.shape_cast %63 : vector<8x8xf32> to vector<1x1x8x8xf32>
    tpu.vector_store %arg12[%c0_60, %c3_61, %c0_62, %c0_63], %66 {strides = array<i32>} : memref<1x4x8x8xf32, #tpu.memory_space<vmem>>, vector<1x1x8x8xf32>,
    %67 = vector.extract_strided_slice %20 {offsets = [0, 24], sizes = [8, 8], strides = [1, 1]} : vector<8x32xf32> to vector<8x8xf32>
    %c0_64 = arith.constant 0 : index
    %c3_65 = arith.constant 3 : index
    %c0_66 = arith.constant 0 : index
    %c0_67 = arith.constant 0 : index
    %68 = vector.load %arg13[%c0_64, %c3_65, %c0_66, %c0_67] : memref<1x4x8x8xf32, #tpu.memory_space<vmem>>, vector<1x1x8x8xf32>
    %69 = vector.shape_cast %68 : vector<1x1x8x8xf32> to vector<8x8xf32>
    %70 = vector.shape_cast %67 : vector<8x8xf32> to vector<1x1x8x8xf32>
    tpu.vector_store %arg13[%c0_64, %c3_65, %c0_66, %c0_67], %70 {strides = array<i32>} : memref<1x4x8x8xf32, #tpu.memory_space<vmem>>, vector<1x1x8x8xf32>,
    return
  }
  func.func @transform_0(%arg0: i32, %arg1: i32) -> (i32, i32, i32) {
    %c0_i32 = arith.constant 0 : i32
    %c0_i32_0 = arith.constant 0 : i32
    return %arg0, %arg1, %c0_i32 : i32, i32, i32
  }
  func.func @transform_1(%arg0: i32, %arg1: i32) -> (i32, i32, i32) {
    %c0_i32 = arith.constant 0 : i32
    %c0_i32_0 = arith.constant 0 : i32
    return %arg0, %arg1, %c0_i32 : i32, i32, i32
  }
  func.func @transform_2(%arg0: i32, %arg1: i32) -> (i32, i32, i32) {
    %c0_i32 = arith.constant 0 : i32
    %c0_i32_0 = arith.constant 0 : i32
    return %arg0, %arg1, %c0_i32 : i32, i32, i32
  }
  func.func @transform_3(%arg0: i32, %arg1: i32) -> (i32, i32) {
    %c0_i32 = arith.constant 0 : i32
    %c0_i32_0 = arith.constant 0 : i32
    %c0_i32_1 = arith.constant 0 : i32
    return %c0_i32, %c0_i32_0 : i32, i32
  }
  func.func @transform_4(%arg0: i32, %arg1: i32) -> (i32, i32) {
    %c0_i32 = arith.constant 0 : i32
    %c0_i32_0 = arith.constant 0 : i32
    %c0_i32_1 = arith.constant 0 : i32
    return %c0_i32, %c0_i32_0 : i32, i32
  }
  func.func @transform_5(%arg0: i32, %arg1: i32) -> (i32, i32) {
    %c0_i32 = arith.constant 0 : i32
    %c0_i32_0 = arith.constant 0 : i32
    %c0_i32_1 = arith.constant 0 : i32
    return %c0_i32, %c0_i32_0 : i32, i32
  }
  func.func @transform_6(%arg0: i32, %arg1: i32) -> (i32, i32) {
    %c0_i32 = arith.constant 0 : i32
    %c0_i32_0 = arith.constant 0 : i32
    %c0_i32_1 = arith.constant 0 : i32
    return %c0_i32, %c0_i32_0 : i32, i32
  }
  func.func @transform_7(%arg0: i32, %arg1: i32) -> (i32, i32) {
    %c0_i32 = arith.constant 0 : i32
    %c0_i32_0 = arith.constant 0 : i32
    %c0_i32_1 = arith.constant 0 : i32
    return %c0_i32, %c0_i32_0 : i32, i32
  }
  func.func @transform_8(%arg0: i32, %arg1: i32) -> (i32, i32) {
    %c0_i32 = arith.constant 0 : i32
    %c0_i32_0 = arith.constant 0 : i32
    %c0_i32_1 = arith.constant 0 : i32
    return %c0_i32, %c0_i32_0 : i32, i32
  }
  func.func @transform_9(%arg0: i32, %arg1: i32) -> (i32, i32, i32, i32) {
    %c0_i32 = arith.constant 0 : i32
    %c0_i32_0 = arith.constant 0 : i32
    %c0_i32_1 = arith.constant 0 : i32
    return %arg0, %c0_i32, %arg1, %c0_i32_0 : i32, i32, i32, i32
  }
  func.func @transform_10(%arg0: i32, %arg1: i32) -> (i32, i32, i32, i32) {
    %c0_i32 = arith.constant 0 : i32
    %c0_i32_0 = arith.constant 0 : i32
    %c0_i32_1 = arith.constant 0 : i32
    return %arg0, %c0_i32, %arg1, %c0_i32_0 : i32, i32, i32, i32
  }
  func.func @transform_11(%arg0: i32, %arg1: i32) -> (i32, i32, i32, i32) {
    %c0_i32 = arith.constant 0 : i32
    %c0_i32_0 = arith.constant 0 : i32
    %c0_i32_1 = arith.constant 0 : i32
    return %arg0, %c0_i32, %arg1, %c0_i32_0 : i32, i32, i32, i32
  }
}

</mosaic_0001>

<bundles_post_ra>
// kernel: tpu_custom_call.1
= control target key start
LH: loop header
LB: loop body
LE: loop exit
PB: predicated region body
PF: predicated region fallthrough
CT: control target
= control target key end

     0   :  { %s2280_s0 = inlined_call_operand.hbm [shape: f32[2,8,32], index: 0, kind: input, shape index: {}]   ;;  %s2281_s1 = inlined_call_operand.hbm [shape: f32[2,8,32], index: 1, kind: input, shape index: {}]   ;;  %s2282_s2 = inlined_call_operand.hbm [shape: f32[2,8,32], index: 2, kind: input, shape index: {}]   ;;  %s2283_s3 = inlined_call_operand.hbm [shape: f32[32,32], index: 3, kind: input, shape index: {}]   ;;  %s2284_s4 = inlined_call_operand.vmem [shape: f32[1,32], index: 4, kind: input, shape index: {}]   ;;  %s2285_s5 = inlined_call_operand.hbm [shape: f32[32,32], index: 5, kind: input, shape index: {}]   ;;  %s2286_s6 = inlined_call_operand.vmem [shape: f32[1,32], index: 6, kind: input, shape index: {}]   ;;  %s2287_s7 = inlined_call_operand.hbm [shape: f32[32,32], index: 7, kind: input, shape index: {}]   ;;  %s2288_s8 = inlined_call_operand.vmem [shape: f32[1,32], index: 8, kind: input, shape index: {}]   ;;  %s2289_s9 = inlined_call_operand.hbm [shape: f32[2,4,8,8], index: 9, kind: output, shape index: {0}]   ;;  %s2290_s10 = inlined_call_operand.hbm [shape: f32[2,4,8,8], index: 10, kind: output, shape index: {1}]   ;;  %s2291_s11 = inlined_call_operand.hbm [shape: f32[2,4,8,8], index: 11, kind: output, shape index: {2}]  }
   0x1   :  { %2321 = sst [smem:[#allocation31_spill]] %s2281_s1 }
   0x2   :  { %2322 = sst [smem:[#allocation32_spill]] %s2283_s3 }
   0x3   :  { %2323 = sst [smem:[#allocation33_spill]] %s2286_s6 }
   0x4   :  { %2324 = sst [smem:[#allocation34_spill]] %s2288_s8 }
   0x5   :  { %2325 = sst [smem:[#allocation35_spill]] %s2289_s9 }
   0x6   :  { %2326 = sst [smem:[#allocation36_spill]] %s2290_s10 }
   0x7   :  { %2327 = sst [smem:[#allocation37_spill]] %s2291_s11 }
   0x8   :  { %17 = vsyncpa [#allocation3], 0 }
   0x9   :  { %19 = vsyncpa [#allocation3 + $0x1], 0 }
   0xa   :  { %20 = vsyncpa [#allocation6], 0 }
   0xb   :  { %22 = vsyncpa [#allocation6 + $0x1], 0 }
   0xc   :  { %23 = vsyncpa [#allocation9], 0 }
   0xd   :  { %24 = vsyncpa [#allocation12], 0 }
   0xe   :  { %25 = vsyncpa [#allocation4], 0 }
   0xf   :  { %27 = vsyncpa [#allocation4 + $0x1], 0 }
  0x10   :  { %28 = vsyncpa [#allocation15], 0 }
  0x11   :  { %30 = vsyncpa [#allocation15 + $0x1], 0  ;;  %s1803_s17 = smov 0   ;;  %s1805_s18 = smov 0  }
  0x12   :  { %s1807_s19 = smov 0   ;;  %s1809_s20 = smov 0  }
  0x13   :  { %s1811_s21 = smov 0   ;;  %s1813_s22 = smov 0  }
  0x14 LB: > { %2328 = sst [smem:[#allocation23_spill]] %s1702_s17  ;;  %s1834_s23 = sadd.s32 4294967295, %s1722_s22   ;;  %s1722_s22 = sphi %s1813_s22, %s36_s22   ;;  %s1718_s21 = sphi %s1811_s21, %s2378_s21   ;;  %s1714_s20 = sphi %s1809_s20, %s2377_s20   ;;  %s1710_s19 = sphi %s1807_s19, %s2381_s19   ;;  %s1706_s18 = sphi %s1805_s18, %s2380_s18   ;;  %s1702_s17 = sphi %s1803_s17, %s2379_s17  }
  0x15   : > { %2329 = sst [smem:[#allocation24_spill]] %s1714_s20  ;;  %s2292_s24 = sadd.s32 4294967294, %s1722_s22  }
  0x16   : > { %2330 = sst [smem:[#allocation25_spill]] %s1718_s21  ;;  %p70_p0 = scmp.ne.s32.totalorder %s1706_s18, %s1702_s17 }
  0x17   : > { %2331 = sst [smem:[#allocation26_spill]] %s1722_s22  ;;  %p2295_p1 = scmp.eq.s32.totalorder %s1834_s23, 0 }
  0x18   : > { %p284_p3 = scmp.eq.s32.totalorder %s2292_s24, 1  ;;  %p1155_p5 = scmp.ge.s32.totalorder %s1722_s22, 1 }
  0x19   : > { %p1845_p4 = por %p2295_p1, %p70_p0  ;;  %p347_p7 = scmp.lt.s32.totalorder %s1722_s22, 3 }
  0x1a   : > { %p1850_p6 = por %p284_p3, %p70_p0  ;;  %s1724_s28 = smov [#allocation8]  }
  0x1b   : > { %s2332_s25 = scalar_select %p1845_p4, 1, 0 }
  0x1c   : > { %s2333_s26 = scalar_select %p1850_p6, 1, 0 }
  0x1d   : > { %p1855_p8 = pnand %p1155_p5, %p347_p7  ;;  %s359_s29 = sshll.u32 %s1724_s28, 4  ;;  %s360_s29 = int_to_ptr.vmem [resolvable:$true] %s359_s29 }
  0x1e   : > { %2334 = sst [smem:[#allocation27_spill]] %s2333_s26  ;;  %s48_s12 = sadd.s32 1, %s1718_s21 }
  0x1f   : > { %s2335_s27 = scalar_select %p1855_p8, 1, 0 }
  0x20   : > { %p1295_p9 = pneg %p1855_p8  ;;  %s2337_s3 = sld [smem:[#allocation32_spill]] }
  0x22   : > { %p1864_p11 = pnand %p1295_p9, %p2295_p1 }
  0x24   : > { %s2336_s30 = scalar_select %p1864_p11, 1, 0 }
  0x25   : > { %p1877_p13 = pneg %p1864_p11 }
  0x26   : > { %s1394_s15 = scalar_lea.hbm %s2337_s3, 512 }
  0x27   : > { %p1395_p12 = scmp.ne.s32.totalorder %s2337_s3, %s1394_s15  ;;  %p1401_p5 = scmp.lt.u32.totalorder %s1394_s15, %s2337_s3 }
  0x28   : > { %s2338_s28 = scalar_select %p1877_p13, 1, 0 }
  0x29   : > { %p1397_p0 = pnand %p1877_p13, %p1395_p12 }
  0x2b   : > { %p1398_p3 = pneg %p1397_p0 }
  0x2d   : > { %p1403_p7 = pnand %p1401_p5, %p1398_p3 }
  0x2f   : > { %1406 = shalt.err (!%p1403_p7)
}
  0x30   : > { %s1407_s13 = scalar_lea.vmem %s360_s29, 512  ;;  %p1415_p2 = scmp.lt.s32.totalorder %s360_s29, %s360_s29 }
  0x31   : > { %p1408_p9 = scmp.ne.s32.totalorder %s360_s29, %s1407_s13  ;;  %p1416_p6 = scmp.lt.s32.totalorder %s1407_s13, %s1407_s13 }
  0x33   : > { %p1410_p10 = pnand %p1408_p9, %p1877_p13  ;;  %p1417_p4 = por %p1416_p6, %p1415_p2 }
  0x35   : > { %p1411_p1 = pneg %p1410_p10 }
  0x37   : > { %p1418_p8 = pnand %p1417_p4, %p1411_p1 }
  0x39   : > { %1421 = shalt.err (!%p1418_p8)
}
  0x3a   : > { %s2299_s24 = smov 128   ;;  %s2301_s17 = smov 8  }
  0x3b   : > { %1298 = dma.hbm_to_vmem [thread:$0]  (!%p1864_p11), %s2337_s3, 512, %s360_s29, [#allocation9], %s2299_s24, %s2299_s24, %s2301_s17  }
  0x3c   : > { %p50_p1 = scmp.ge.s32.totalorder %s48_s12, 2  ;;  %s57_s15 = sadd.s32 1, %s1710_s19 }
  0x3d   : > { %p64_p2 = scmp.ne.s32.totalorder %s1710_s19, %s1706_s18  ;;  %p65_p4 = scmp.eq.s32.totalorder %s1722_s22, 0 }
  0x3e   : > { %s2383_s12 = smov (%p50_p1, %s48_s12), 0  ;;  %p2340_p8 = scmp.eq.s32.totalorder %s1834_s23, 1 }
  0x3f   : > { %2339 = sst [smem:[#allocation28_spill]] %s2383_s12  ;;  %p66_p6 = por %p65_p4, %p64_p2 }
  0x40   : > { %p1904_p10 = por %p2340_p8, %p64_p2  ;;  %s52_s13 = ssub.s32 %s1718_s21, %s2383_s12 }
  0x41   : > { %p1328_p12 = scmp.lt.s32.totalorder %s1722_s22, 2  ;;  %p55_p0 = scmp.eq.s32.totalorder %s52_s13, 0 }
  0x42   : > { %s2341_s16 = scalar_select %p1904_p10, 1, 0 }
  0x43   : > { %s2304_s11 = sand.u32 1, %s1710_s19   ;;  %s1917_s26 = sshll.u32 %s1718_s21, 7 }
  0x44   : > { %2342 = sst [smem:[#allocation29_spill]] %s2341_s16  ;;  %s1914_s29 = sshll.u32 %s2304_s11, 3 }
  0x45   : > { %s1920_s14 = scalar_select %p55_p0, %s1710_s19, %s57_s15  }
  0x46   : > { %p1922_p3 = pnand %p1328_p12, %p66_p6  ;;  %s427_s17 = sand.u32 1, %s1722_s22  }
  0x47   : > { %2343 = sst [smem:[#allocation30_spill]] %s1920_s14  ;;  %s2345_s1 = sld [smem:[#allocation31_spill]] }
  0x48   : > { %s2344_s24 = scalar_select %p1922_p3, 1, 0 }
  0x49   : > { %s431_s11 = scalar_lea.vmem [#allocation5], %s1914_s29  ;;  %s1727_s15 = smov [#allocation10]  }
  0x4a   : > { %s439_s21 = sshll.u32 %s431_s11, 4  ;;  %s1936_s14 = sshll.u32 %s1727_s15, 4  ;;  %s1934_s21 = int_to_ptr.vmem [resolvable:$true] %s439_s21  ;;  %s376_s14 = int_to_ptr.vmem [resolvable:$true] %s1936_s14 }
  0x4b   : > { %s1938_s9 = scalar_lea.sflag [#allocation6], %s427_s17  ;;  %p1944_p7 = pneg %p1922_p3 }
  0x4d   : > { %s1931_s13 = scalar_lea.hbm %s2345_s1, %s1917_s26  ;;  %s1427_s22 = scalar_lea.hbm %s2345_s1, 256 }
  0x4e   : > { %s1422_s10 = scalar_lea.hbm %s1931_s13, 128  ;;  %p1428_p2 = scmp.lt.u32.totalorder %s1931_s13, %s2345_s1 }
  0x4f   : > { %p1423_p5 = scmp.ne.s32.totalorder %s1931_s13, %s1422_s10  ;;  %p1429_p4 = scmp.lt.u32.totalorder %s1427_s22, %s1422_s10 }
  0x50   : > { %s2346_s3 = scalar_select %p1944_p7, 1, 0 }
  0x51   : > { %p1425_p9 = pnand %p1944_p7, %p1423_p5  ;;  %p1430_p6 = por %p1429_p4, %p1428_p2 }
  0x52   : > { %p1431_p8 = scmp.lt.u32.totalorder %s1422_s10, %s1931_s13 }
  0x53   : > { %p1426_p1 = pneg %p1425_p9 }
  0x54   : > { %p1432_p12 = por %p1431_p8, %p1430_p6 }
  0x56   : > { %p1433_p0 = pnand %p1432_p12, %p1426_p1 }
  0x58   : > { %1436 = shalt.err (!%p1433_p0)
}
  0x59   : > { %s1437_s17 = scalar_lea.vmem %s1934_s21, 128  ;;  %s1728_s12 = smov [#allocation5]  }
  0x5a   : > { %p1438_p5 = scmp.ne.s32.totalorder %s1934_s21, %s1437_s17  ;;  %s1442_s11 = sshll.u32 %s1728_s12, 4  ;;  %s1443_s11 = int_to_ptr.vmem [resolvable:$false] %s1442_s11 }
  0x5b   : > { %s1444_s16 = scalar_lea.vmem %s1443_s11, 256  ;;  %p1445_p11 = scmp.lt.s32.totalorder %s1934_s21, %s1443_s11 }
  0x5c   : > { %p1440_p9 = pnand %p1438_p5, %p1944_p7  ;;  %p1446_p13 = scmp.lt.s32.totalorder %s1444_s16, %s1437_s17 }
  0x5e   : > { %p1441_p10 = pneg %p1440_p9  ;;  %p1447_p2 = por %p1446_p13, %p1445_p11 }
  0x60   : > { %p1448_p4 = pnand %p1447_p2, %p1441_p10 }
  0x62   : > { %1451 = shalt.err (!%p1448_p4)
}
  0x63   : > { %1311 = dma.hbm_to_vmem [thread:$0]  (!%p1922_p3), %s1931_s13, 128, %s1934_s21, %s1938_s9  }
  0x64   : > { %s1452_s15 = scalar_lea.hbm %s2285_s5, 512  ;;  %p2347_p11 = scmp.ne.s32.totalorder %s2338_s28, 0 }
  0x65   : > { %p1453_p1 = scmp.ne.s32.totalorder %s2285_s5, %s1452_s15  ;;  %p1459_p6 = scmp.lt.u32.totalorder %s1452_s15, %s2285_s5 }
  0x67   : > { %p1455_p13 = pnand %p1453_p1, %p2347_p11 }
  0x69   : > { %p1456_p10 = pneg %p1455_p13 }
  0x6b   : > { %p1461_p8 = pnand %p1459_p6, %p1456_p10 }
  0x6d   : > { %1464 = shalt.err (!%p1461_p8)
}
  0x6e   : > { %s1465_s16 = scalar_lea.vmem %s376_s14, 512  ;;  %p1473_p9 = scmp.lt.s32.totalorder %s376_s14, %s376_s14 }
  0x6f   : > { %p1466_p12 = scmp.ne.s32.totalorder %s376_s14, %s1465_s16  ;;  %p1474_p2 = scmp.lt.s32.totalorder %s1465_s16, %s1465_s16 }
  0x71   : > { %p1468_p0 = pnand %p1466_p12, %p2347_p11  ;;  %p1475_p4 = por %p1474_p2, %p1473_p9 }
  0x73   : > { %p1469_p5 = pneg %p1468_p0 }
  0x75   : > { %p1476_p3 = pnand %p1475_p4, %p1469_p5 }
  0x77   : > { %1479 = shalt.err (!%p1476_p3)
}
  0x78   : > { %p2348_p1 = scmp.ne.s32.totalorder %s2336_s30, 0  ;;  %s2349_s1 = smov 8  }
  0x79   : > { %s2350_s21 = smov 128   ;;  %s1729_s22 = smov [#allocation11]  }
  0x7a   : > { %1301 = dma.hbm_to_vmem [thread:$0]  (!%p2348_p1), %s2285_s5, 512, %s376_s14, [#allocation9], %s2350_s21, %s2350_s21, %s2349_s1  }
  0x7b   : > { %s391_s15 = sshll.u32 %s1729_s22, 4  ;;  %s1480_s11 = scalar_lea.hbm %s2287_s7, 512  ;;  %s392_s15 = int_to_ptr.vmem [resolvable:$true] %s391_s15 }
  0x7c   : > { %p1481_p3 = scmp.ne.s32.totalorder %s2287_s7, %s1480_s11  ;;  %p1487_p6 = scmp.lt.u32.totalorder %s1480_s11, %s2287_s7 }
  0x7e   : > { %p1483_p13 = pnand %p1481_p3, %p2347_p11 }
  0x80   : > { %p1484_p10 = pneg %p1483_p13 }
  0x82   : > { %p1489_p8 = pnand %p1487_p6, %p1484_p10 }
  0x84   : > { %1492 = shalt.err (!%p1489_p8)
}
  0x85   : > { %s1493_s14 = scalar_lea.vmem %s392_s15, 512  ;;  %p1501_p9 = scmp.lt.s32.totalorder %s392_s15, %s392_s15 }
  0x86   : > { %p1494_p12 = scmp.ne.s32.totalorder %s392_s15, %s1493_s14  ;;  %p1502_p2 = scmp.lt.s32.totalorder %s1493_s14, %s1493_s14 }
  0x88   : > { %p1496_p0 = pnand %p1494_p12, %p2347_p11  ;;  %p1503_p4 = por %p1502_p2, %p1501_p9 }
  0x8a   : > { %p1497_p5 = pneg %p1496_p0 }
  0x8c   : > { %p1504_p7 = pnand %p1503_p4, %p1497_p5 }
  0x8e   : > { %1507 = shalt.err (!%p1504_p7)
}
  0x8f   : > { %1304 = dma.hbm_to_vmem [thread:$0]  (!%p2348_p1), %s2287_s7, 512, %s392_s15, [#allocation12], %s2350_s21, %s2350_s21, %s2349_s1  }
  0x90   : > { %s2015_s13 = scalar_lea.hbm %s2280_s0, %s1917_s26  ;;  %s412_s30 = scalar_lea.vmem [#allocation2], %s1914_s29 }
  0x91   : > { %s420_s10 = sshll.u32 %s412_s30, 4  ;;  %s2351_s22 = sand.u32 1, %s1710_s19   ;;  %s421_s10 = int_to_ptr.vmem [resolvable:$true] %s420_s10 }
  0x92   : > { %s409_s12 = scalar_lea.sflag [#allocation3], %s2351_s22  ;;  %s1508_s17 = scalar_lea.hbm %s2015_s13, 128 }
  0x93   : > { %p1509_p7 = scmp.ne.s32.totalorder %s2015_s13, %s1508_s17  ;;  %p2352_p11 = scmp.ne.s32.totalorder %s2346_s3, 0 }
  0x94   : > { %s1513_s15 = scalar_lea.hbm %s2280_s0, 256  ;;  %p1514_p1 = scmp.lt.u32.totalorder %s2015_s13, %s2280_s0 }
  0x95   : > { %p1511_p3 = pnand %p1509_p7, %p2352_p11  ;;  %p1515_p10 = scmp.lt.u32.totalorder %s1513_s15, %s1508_s17 }
  0x96   : > { %p1517_p8 = scmp.lt.u32.totalorder %s1508_s17, %s2015_s13 }
  0x97   : > { %p1512_p13 = pneg %p1511_p3  ;;  %p1516_p6 = por %p1515_p10, %p1514_p1 }
  0x99   : > { %p1518_p12 = por %p1517_p8, %p1516_p6 }
  0x9b   : > { %p1519_p0 = pnand %p1518_p12, %p1512_p13 }
  0x9d   : > { %1522 = shalt.err (!%p1519_p0)
}
  0x9e   : > { %s1523_s14 = scalar_lea.vmem %s421_s10, 128  ;;  %s1730_s6 = smov [#allocation2]  }
  0x9f   : > { %p1524_p5 = scmp.ne.s32.totalorder %s421_s10, %s1523_s14  ;;  %s1528_s8 = sshll.u32 %s1730_s6, 4  ;;  %s1529_s8 = int_to_ptr.vmem [resolvable:$false] %s1528_s8 }
  0xa0   : > { %s1530_s20 = scalar_lea.vmem %s1529_s8, 256  ;;  %p1531_p4 = scmp.lt.s32.totalorder %s421_s10, %s1529_s8 }
  0xa1   : > { %p1526_p9 = pnand %p1524_p5, %p2352_p11  ;;  %p1532_p7 = scmp.lt.s32.totalorder %s1530_s20, %s1523_s14 }
  0xa3   : > { %p1527_p2 = pneg %p1526_p9  ;;  %p1533_p3 = por %p1532_p7, %p1531_p4 }
  0xa5   : > { %p1534_p1 = pnand %p1533_p3, %p1527_p2 }
  0xa7   : > { %1537 = shalt.err (!%p1534_p1)
}
  0xa8   : > { %p2353_p10 = scmp.ne.s32.totalorder %s2344_s24, 0  ;;  %s2041_s22 = scalar_lea.hbm %s2282_s2, %s1917_s26 }
  0xa9   : > { %s450_s17 = scalar_lea.vmem [#allocation7], %s1914_s29  ;;  %s1538_s21 = scalar_lea.hbm %s2041_s22, 128 }
  0xaa   : > { %1308 = dma.hbm_to_vmem [thread:$0]  (!%p2353_p10), %s2015_s13, 128, %s421_s10, %s409_s12  }
  0xab   : > { %s458_s1 = sshll.u32 %s450_s17, 4  ;;  %p1539_p13 = scmp.ne.s32.totalorder %s2041_s22, %s1538_s21  ;;  %s459_s1 = int_to_ptr.vmem [resolvable:$true] %s458_s1 }
  0xac   : > { %s1543_s13 = scalar_lea.hbm %s2282_s2, 256  ;;  %p1544_p12 = scmp.lt.u32.totalorder %s2041_s22, %s2282_s2 }
  0xad   : > { %p1541_p6 = pnand %p1539_p13, %p2352_p11  ;;  %p1545_p0 = scmp.lt.u32.totalorder %s1543_s13, %s1538_s21 }
  0xae   : > { %p1547_p9 = scmp.lt.u32.totalorder %s1538_s21, %s2041_s22 }
  0xaf   : > { %p1542_p8 = pneg %p1541_p6  ;;  %p1546_p5 = por %p1545_p0, %p1544_p12 }
  0xb1   : > { %p1548_p2 = por %p1547_p9, %p1546_p5 }
  0xb3   : > { %p1549_p4 = pnand %p1548_p2, %p1542_p8 }
  0xb5   : > { %1552 = shalt.err (!%p1549_p4)
}
  0xb6   : > { %s1553_s29 = scalar_lea.vmem %s459_s1, 128  ;;  %s1731_s26 = smov [#allocation7]  }
  0xb7   : > { %p1554_p7 = scmp.ne.s32.totalorder %s459_s1, %s1553_s29  ;;  %s1558_s16 = sshll.u32 %s1731_s26, 4  ;;  %s1559_s16 = int_to_ptr.vmem [resolvable:$false] %s1558_s16 }
  0xb8   : > { %s1560_s14 = scalar_lea.vmem %s1559_s16, 256  ;;  %p1561_p13 = scmp.lt.s32.totalorder %s459_s1, %s1559_s16 }
  0xb9   : > { %p1556_p3 = pnand %p1554_p7, %p2352_p11  ;;  %p1562_p6 = scmp.lt.s32.totalorder %s1560_s14, %s1553_s29 }
  0xbb   : > { %p1557_p1 = pneg %p1556_p3  ;;  %p1563_p10 = por %p1562_p6, %p1561_p13 }
  0xbd   : > { %p1564_p0 = pnand %p1563_p10, %p1557_p1 }
  0xbf   : > { %1567 = shalt.err (!%p1564_p0)
}
  0xc0   : > { %p2354_p12 = scmp.ne.s32.totalorder %s2344_s24, 0  ;;  %p2355_p8 = scmp.ne.s32.totalorder %s2335_s27, 0 }
  0xc1   : > { %s2065_s3 = sand.u32 (!%p2355_p8), 1, %s1706_s18   ;;  %p2356_p11 = scmp.ne.s32.totalorder (!%p2355_p8), %s2332_s25, 0 }
  0xc2   : > { %1314 = dma.hbm_to_vmem [thread:$0]  (!%p2354_p12), %s2041_s22, 128, %s459_s1, %s1938_s9  }
  0xc3   : > { %467 = sbr.rel (%p2355_p8) target bundleno = 620 (0x26c), region = 56  ;;  %s2068_s6 = sshll.u32 (!%p2355_p8), %s2065_s3, 3 }
  0xc4   : > { %s470_s8 = scalar_lea.sflag (!%p2355_p8), [#allocation3], %s2065_s3  ;;  %s473_s20 = scalar_lea.vmem (!%p2355_p8), [#allocation2], %s2068_s6 }
  0xca   : > { %1677 = dma.done.wait (%p2356_p11), %s470_s8, 128  }
  0xcb   : > { %1679 = vsyncadd (%p2356_p11), %s470_s8, 4294967168  ;;  %s478_s9 = sand.u32 1, %s1834_s23   ;;  %s482_s24 = scalar_lea.vmem [#allocation5], %s2068_s6 }
  0xcc   : > { %s479_s27 = scalar_lea.sflag [#allocation6], %s478_s9 }
  0xcd   : > { %1681 = dma.done.wait (%p2356_p11), %s479_s27, 256  }
  0xce   : > { %1683 = vsyncadd (%p2356_p11), %s479_s27, 4294967040  ;;  %s491_s28 = scalar_lea.vmem [#allocation7], %s2068_s6  ;;  %p2357_p10 = scmp.eq.s32.totalorder %s1834_s23, 0 }
  0xd0   : > { %1685 = dma.done.wait (%p2357_p10), [#allocation9], 1024   ;;  %p2358_p5 = pmov %p2357_p10 }
  0xd2   : > { %1687 = vsyncadd (%p2358_p5), [#allocation9], 4294966272  ;;  %p2359_p9 = pmov %p2358_p5 }
  0xd3   : > { %p2360_p2 = pmov %p2358_p5 }
  0xd4   : > { %1689 = dma.done.wait (%p2359_p9), [#allocation12], 512  }
  0xd5   : > { %1691 = vsyncadd (%p2360_p2), [#allocation12], 4294966784  ;;  %v1732_v0 = vmov 0.0|0.0   ;;  %vm1733_vm0 = vmmov 0   ;;  %v1734_v1 = vmov 0.0   ;;  %v565_v2 = vld [vmem:[#allocation8] sm:$0xff] }
  0xd6   : > { %1253 = vmatprep.subr.bf16.mxu0 %v1732_v0  ;;  %1259 = vmatprep.subr.bf16.mxu1 %v1732_v0  ;;  %v566_v3 = vld [vmem:[#allocation8 + $0x8] sm:$0xff]  ;;  %v650_v4 = vld [vmem:[#allocation10] sm:$0xff]  ;;  %v567_v7 = vld [vmem:[#allocation8 + $0x10] sm:$0xff]  ;;  %vm576_vm1 = vcmask 261120   ;;  %s1173_s25 = sshll.u32 %s2065_s3, 5  ;;  %s2361_s21 = sld [smem:[#allocation33_spill]] }
  0xd7   : > { %1228 = vmatprep.mubr.msk.f32.mxu0 %vm1733_vm0, %v1734_v1  ;;  %1239 = vmatprep.mubr.msk.f32.mxu1 %vm1733_vm0, %v1734_v1  ;;  %v1254_v5 = vpack.c.bf16 %v566_v3, %v565_v2  ;;  %v651_v6 = vld [vmem:[#allocation10 + $0x8] sm:$0xff]  ;;  %v568_v8 = vld [vmem:[#allocation8 + $0x18] sm:$0xff]  ;;  %v652_v10 = vld [vmem:[#allocation10 + $0x10] sm:$0xff]  ;;  %vm819_vm2 = vcmask 64512   ;;  %s2109_s15 = scalar_lea.vmem [#allocation14], %s1173_s25  ;;  %s1735_s11 = smov 104  }
  0xd8   : > { %v1260_v9 = vpack.c.bf16 %v651_v6, %v650_v4  ;;  %v653_v11 = vld [vmem:[#allocation10 + $0x18] sm:$0xff]  ;;  %v1257_v12 = vpack.c.bf16 %v568_v8, %v567_v7  ;;  %v734_v14 = vld [vmem:[#allocation11] sm:$0xff]  ;;  %v735_v15 = vld [vmem:[#allocation11 + $0x8] sm:$0xff]  ;;  %s1736_s13 = smov 120   ;;  %s2113_s10 = scalar_lea.vmem [#allocation13], %s1173_s25 }
  0xd9   : > { %1255 = vmatpush3.bf16.msra.mxu0 %v1254_v5  ;;  %v1263_v13 = vpack.c.bf16 %v653_v11, %v652_v10  ;;  %v562_v16 = vld [vmem:[%s473_s20] sm:$0xff]  ;;  %v1266_v17 = vpack.c.bf16 %v735_v15, %v734_v14  ;;  %v563_v18 = vld [vmem:[%s482_s24] sm:$0xff]  ;;  %s2362_s26 = sld [smem:[#allocation34_spill]]  ;;  %s1737_s16 = smov 112  }
  0xda   : > { %1261 = vmatpush3.bf16.msra.mxu1 %v1260_v9  ;;  %1256 = vmatprep.subr.bf16.mxu0 %v1732_v0  ;;  %v736_v19 = vld [vmem:[#allocation11 + $0x10] sm:$0xff]  ;;  %v737_v20 = vld [vmem:[#allocation11 + $0x18] sm:$0xff]  ;;  %s2363_s14 = sld [smem:[#allocation24_spill]]  ;;  %s2120_s6 = scalar_lea.vmem [#allocation16], %s1173_s25 }
  0xdb   : > { %1262 = vmatprep.subr.bf16.mxu1 %v1732_v0  ;;  %v1269_v21 = vpack.c.bf16 %v737_v20, %v736_v19  ;;  %v564_v22 = vld [vmem:[%s491_s28] sm:$0xff]  ;;  %s2364_s8 = sld [smem:[#allocation29_spill]]  ;;  %s913_s20 = sshll.u32 %s2109_s15, 4  ;;  %s2128_s20 = int_to_ptr.vmem [resolvable:$true] %s913_s20 }
  0xdc   : > { %v1176_v23 = vld [vmem:[%s2284_s4] ss:$0 sm:$0xff]  ;;  %s2365_s25 = sld [smem:[#allocation36_spill]]  ;;  %s2146_s22 = scalar_lea.sflag [#allocation15], %s478_s9 }
  0xdd   : > { %1258 = vmatpush3.bf16.msra.mxu0 %v1257_v12  ;;  %v1178_v24 = vld [vmem:[%s2361_s21] ss:$0 sm:$0xff]  ;;  %s1568_s17 = scalar_lea.vmem %s2128_s20, 512  ;;  %s1738_s1 = smov [#allocation14]  }
  0xde   : > { %1264 = vmatpush3.bf16.msra.mxu1 %v1263_v13  ;;  %1265 = vmatprep.subr.bf16.mxu0 %v1732_v0  ;;  %p1569_p4 = scmp.ne.s32.totalorder %s2128_s20, %s1568_s17  ;;  %s1572_s21 = sshll.u32 %s1738_s1, 4  ;;  %s1573_s21 = int_to_ptr.vmem [resolvable:$false] %s1572_s21 }
  0xdf   : > { %v1180_v32 = vld [vmem:[%s2362_s26] ss:$0 sm:$0xff]  ;;  %p1575_p13 = scmp.lt.s32.totalorder %s2128_s20, %s1573_s21 }
  0xe0   : > { %1229 = vmatmul.mubr.msk.f32.vlgmr.msra.gmra.mrb[0].mxu0 %vm576_vm1, %v562_v16  ;;  %s2126_s27 = sshll.u32 %s2363_s14, 9 }
  0xe1   : > { %1240 = vmatmul.mubr.msk.f32.vlgmr.msra.gmra.mrb[0].mxu1 %vm576_vm1, %v563_v18  ;;  %1267 = vmatpush3.bf16.msra.mxu0 %v1266_v17  ;;  %p2366_p7 = scmp.ne.s32.totalorder %s2364_s8, 0 }
  0xe2   : > { %1268 = vmatprep.subr.bf16.mxu0 %v1732_v0  ;;  %1250 = vmatprep.mubr.msk.f32.mxu0 %vm1733_vm0, %v1734_v1  ;;  %s2138_s30 = scalar_lea.hbm %s2365_s25, %s2126_s27 }
  0xe3   : > { %p1570_p3 = pnand %p1569_p4, %p2366_p7 }
  0xe5   : > { %1270 = vmatpush3.bf16.msra.mxu0 %v1269_v21  ;;  %p1571_p1 = pneg %p1570_p3 }
  0xe8   : > { %1251 = vmatmul.mubr.msk.f32.vlgmr.msra.gmra.mrb[2].mxu0 %vm576_vm1, %v564_v22 }
 0x1b3   : > { %v646_v25 = vpop.f32.mrb[0].mxu0 }
 0x1b4   : > { %v647_v26 = vadd.f32 %v1176_v23, %v646_v25  ;;  %v730_v27 = vpop.f32.mrb[0].mxu1  ;;  %v1230_v28 = vpop.f32.mrb[1].mxu0 }
 0x1b5   : > { %v731_v29 = vadd.f32 %v1178_v24, %v730_v27  ;;  %v1241_v30 = vpop.f32.mrb[1].mxu1 }
 0x1b6   : > { %v818_v31 = vmul.f32 0.35355338, %v647_v26 }
 0x1b7   : > { %821 = vst.msk [vmem:[%s2109_s15] sm:$0xff] %vm819_vm2, %v731_v29  ;;  %861 = vrot.lane.b32.xlu1 %v731_v29, %s1735_s11  ;;  %830 = vrot.lane.b32.xlu0 %v731_v29, %s1736_s13 }
 0x1b8   : > { %820 = vst.msk [vmem:[%s2113_s10] sm:$0xff] %vm819_vm2, %v818_v31 }
 0x1bb   : > { %846 = vrot.lane.b32.xlu0 %v731_v29, %s1737_s16  ;;  %824 = vrot.lane.b32.xlu1 %v818_v31, %s1736_s13  ;;  %v814_v33 = vpop.f32.mrb[2].mxu0 }
 0x1bc   : > { %v815_v34 = vadd.f32 %v1180_v32, %v814_v33  ;;  %v1252_v35 = vpop.f32.mrb[3].mxu0 }
 0x1be   : > { %822 = vst.msk [vmem:[%s2120_s6] sm:$0xff] %vm819_vm2, %v815_v34 }
 0x1bf   : > { %841 = vrot.lane.b32.xlu1 %v818_v31, %s1737_s16  ;;  %836 = vrot.lane.b32.xlu0 %v815_v34, %s1736_s13 }
 0x1c3   : > { %856 = vrot.lane.b32.xlu1 %v818_v31, %s1735_s11  ;;  %851 = vrot.lane.b32.xlu0 %v815_v34, %s1737_s16 }
 0x1c7   : > { %866 = vrot.lane.b32.xlu0 %v815_v34, %s1735_s11  ;;  %s1574_s11 = scalar_lea.vmem %s1573_s21, 1024 }
 0x1c8   : > { %p1576_p6 = scmp.lt.s32.totalorder %s1574_s11, %s1568_s17 }
 0x1ca   : > { %p1577_p0 = por %p1576_p6, %p1575_p13 }
 0x1cc   : > { %p1578_p12 = pnand %p1577_p0, %p1571_p1 }
 0x229   : > { %v862_v36 = vpop.permute.xlu1 %861  ;;  %v831_v37 = vpop.permute.xlu0 %830 }
 0x22a   : > { %1189 = vst.msk [vmem:[%s2109_s15 + $0x18] sm:$0xff] %vm819_vm2, %v862_v36  ;;  %1183 = vst.msk [vmem:[%s2109_s15 + $0x8] sm:$0xff] %vm819_vm2, %v831_v37 }
 0x22d   : > { %v847_v38 = vpop.permute.xlu0 %846  ;;  %v825_v39 = vpop.permute.xlu1 %824 }
 0x22e   : > { %1186 = vst.msk [vmem:[%s2109_s15 + $0x10] sm:$0xff] %vm819_vm2, %v847_v38  ;;  %1182 = vst.msk [vmem:[%s2113_s10 + $0x8] sm:$0xff] %vm819_vm2, %v825_v39 }
 0x22f   : > { %1581 = shalt.err (!%p1578_p12)
}
 0x230   : > { %s1582_s23 = scalar_lea.hbm %s2138_s30, 512  ;;  %s1586_s13 = scalar_lea.hbm %s2365_s25, 1024 }
 0x231   : > { %p1583_p8 = scmp.ne.s32.totalorder %s2138_s30, %s1582_s23  ;;  %p1587_p5 = scmp.lt.u32.totalorder %s2138_s30, %s2365_s25 }
 0x232   : > { %p1588_p9 = scmp.lt.u32.totalorder %s1586_s13, %s1582_s23  ;;  %p1590_p4 = scmp.lt.u32.totalorder %s1582_s23, %s2138_s30 }
 0x233   : > { %p1584_p11 = pnand %p1583_p8, %p2366_p7 }
 0x234   : > { %p1589_p2 = por %p1588_p9, %p1587_p5 }
 0x235   : > { %p1585_p10 = pneg %p1584_p11 }
 0x236   : > { %p1591_p3 = por %p1590_p4, %p1589_p2 }
 0x238   : > { %p1592_p1 = pnand %p1591_p3, %p1585_p10 }
 0x23a   : > { %1595 = shalt.err (!%p1592_p1)
}
 0x23b   : > { %s1739_s26 = smov 128   ;;  %s1740_s16 = smov 8   ;;  %v842_v40 = vpop.permute.xlu1 %841  ;;  %v837_v41 = vpop.permute.xlu0 %836 }
 0x23c   : > { %1290 = dma.vmem_to_hbm [thread:$0]  (%p2366_p7), %s2128_s20, 512, %s2138_s30, %s2146_s22, %s1739_s26, %s1739_s26, %s1740_s16  }
 0x23d   : > { %s896_s14 = sshll.u32 %s2113_s10, 4  ;;  %1185 = vst.msk [vmem:[%s2113_s10 + $0x10] sm:$0xff] %vm819_vm2, %v842_v40  ;;  %1184 = vst.msk [vmem:[%s2120_s6 + $0x8] sm:$0xff] %vm819_vm2, %v837_v41  ;;  %s2367_s17 = sld [smem:[#allocation35_spill]]  ;;  %s2178_s14 = int_to_ptr.vmem [resolvable:$true] %s896_s14 }
 0x23e   : > { %s930_s11 = sshll.u32 %s2120_s6, 4  ;;  %s872_s20 = scalar_lea.sflag [#allocation4], %s2065_s3  ;;  %s2220_s11 = int_to_ptr.vmem [resolvable:$true] %s930_s11 }
 0x23f   : > { %v857_v42 = vpop.permute.xlu1 %856  ;;  %v852_v43 = vpop.permute.xlu0 %851  ;;  %s1596_s30 = scalar_lea.vmem %s2178_s14, 512  ;;  %s1741_s23 = smov [#allocation13]  }
 0x240   : > { %1188 = vst.msk [vmem:[%s2113_s10 + $0x18] sm:$0xff] %vm819_vm2, %v857_v42  ;;  %1187 = vst.msk [vmem:[%s2120_s6 + $0x10] sm:$0xff] %vm819_vm2, %v852_v43  ;;  %p1597_p13 = scmp.ne.s32.totalorder %s2178_s14, %s1596_s30  ;;  %s1600_s9 = sshll.u32 %s1741_s23, 4  ;;  %s1601_s9 = int_to_ptr.vmem [resolvable:$false] %s1600_s9 }
 0x241   : > { %s1602_s15 = scalar_lea.vmem %s1601_s9, 1024  ;;  %p1603_p12 = scmp.lt.s32.totalorder %s2178_s14, %s1601_s9 }
 0x242   : > { %p1598_p6 = pnand %p1597_p13, %p2366_p7  ;;  %p1604_p8 = scmp.lt.s32.totalorder %s1602_s15, %s1596_s30 }
 0x243   : > { %s2368_s1 = smov %s2367_s17  ;;  %s2184_s21 = scalar_lea.hbm %s2367_s17, %s2126_s27 }
 0x244   : > { %p1599_p0 = pneg %p1598_p6  ;;  %p1605_p11 = por %p1604_p8, %p1603_p12 }
 0x246   : > { %p1606_p10 = pnand %p1605_p11, %p1599_p0 }
 0x248   : > { %1609 = shalt.err (!%p1606_p10)
}
 0x249   : > { %s1610_s10 = scalar_lea.hbm %s2184_s21, 512  ;;  %s1614_s29 = scalar_lea.hbm %s2368_s1, 1024 }
 0x24a   : > { %p1611_p5 = scmp.ne.s32.totalorder %s2184_s21, %s1610_s10  ;;  %p1615_p4 = scmp.lt.u32.totalorder %s2184_s21, %s2368_s1 }
 0x24b   : > { %p1616_p3 = scmp.lt.u32.totalorder %s1614_s29, %s1610_s10  ;;  %p1618_p13 = scmp.lt.u32.totalorder %s1610_s10, %s2184_s21 }
 0x24c   : > { %p1612_p9 = pnand %p1611_p5, %p2366_p7 }
 0x24d   : > { %p1617_p1 = por %p1616_p3, %p1615_p4 }
 0x24e   : > { %p1613_p2 = pneg %p1612_p9 }
 0x24f   : > { %p1619_p6 = por %p1618_p13, %p1617_p1 }
 0x251   : > { %p1620_p0 = pnand %p1619_p6, %p1613_p2 }
 0x253   : > { %1623 = shalt.err (!%p1620_p0)
}
 0x254   : > { %1289 = dma.vmem_to_hbm [thread:$0]  (%p2366_p7), %s2178_s14, 512, %s2184_s21, %s872_s20, %s1739_s26, %s1739_s26, %s1740_s16   ;;  %v867_v44 = vpop.permute.xlu0 %866 }
 0x255   : > { %s2369_s23 = sld [smem:[#allocation37_spill]]  ;;  %1190 = vst.msk [vmem:[%s2120_s6 + $0x18] sm:$0xff] %vm819_vm2, %v867_v44  ;;  %s1624_s3 = scalar_lea.vmem %s2220_s11, 512 }
 0x256   : > { %p1625_p12 = scmp.ne.s32.totalorder %s2220_s11, %s1624_s3  ;;  %s1742_s14 = smov [#allocation16]  }
 0x257   : > { %s1628_s21 = sshll.u32 %s1742_s14, 4  ;;  %s1629_s21 = int_to_ptr.vmem [resolvable:$false] %s1628_s21 }
 0x258   : > { %p1626_p8 = pnand %p1625_p12, %p2366_p7  ;;  %s1630_s20 = scalar_lea.vmem %s1629_s21, 1024 }
 0x259   : > { %p1631_p10 = scmp.lt.s32.totalorder %s2220_s11, %s1629_s21  ;;  %p1632_p5 = scmp.lt.s32.totalorder %s1630_s20, %s1624_s3 }
 0x25a   : > { %p1627_p11 = pneg %p1626_p8 }
 0x25b   : > { %s2226_s9 = scalar_lea.hbm %s2369_s23, %s2126_s27  ;;  %p1633_p9 = por %p1632_p5, %p1631_p10 }
 0x25d   : > { %p1634_p2 = pnand %p1633_p9, %p1627_p11 }
 0x25f   : > { %1637 = shalt.err (!%p1634_p2)
}
 0x260   : > { %s1638_s6 = scalar_lea.hbm %s2226_s9, 512  ;;  %s1642_s10 = scalar_lea.hbm %s2369_s23, 1024 }
 0x261   : > { %p1639_p4 = scmp.ne.s32.totalorder %s2226_s9, %s1638_s6  ;;  %p1643_p13 = scmp.lt.u32.totalorder %s2226_s9, %s2369_s23 }
 0x262   : > { %p1644_p6 = scmp.lt.u32.totalorder %s1642_s10, %s1638_s6  ;;  %p1646_p12 = scmp.lt.u32.totalorder %s1638_s6, %s2226_s9 }
 0x263   : > { %p1640_p3 = pnand %p1639_p4, %p2366_p7 }
 0x264   : > { %p1645_p0 = por %p1644_p6, %p1643_p13 }
 0x265   : > { %p1641_p1 = pneg %p1640_p3 }
 0x266   : > { %p1647_p8 = por %p1646_p12, %p1645_p0 }
 0x268   : > { %p1648_p11 = pnand %p1647_p8, %p1641_p1 }
 0x26a   : > { %1651 = shalt.err (!%p1648_p11)
}
 0x26b   : > { %1291 = dma.vmem_to_hbm [thread:$0]  (%p2366_p7), %s2220_s11, 512, %s2226_s9, %s2146_s22, %s1739_s26, %s1739_s26, %s1740_s16  }
 0x26c PF: > { %s2370_s29 = sld [smem:[#allocation23_spill]]  ;;  %s2371_s24 = sld [smem:[#allocation27_spill]] }
 0x26d   : > { %s2372_s28 = sld [smem:[#allocation26_spill]] }
 0x272   : > { %s945_s17 = sand.u32 1, %s2370_s29   ;;  %p2373_p10 = scmp.ne.s32.totalorder %s2371_s24, 0 }
 0x273   : > { %p2374_p5 = scmp.ge.s32.totalorder %s2372_s28, 2  ;;  %s946_s30 = scalar_lea.sflag [#allocation4], %s945_s17 }
 0x275   : > { %p1316_p9 = pnand %p2374_p5, %p2373_p10 }
 0x277   : > { %1693 = dma.done.wait (!%p1316_p9), %s946_s30, 512  }
 0x278   : > { %1695 = vsyncadd (!%p1316_p9), %s946_s30, 4294966784  ;;  %s2375_s8 = sadd.s32 4294967294, %s2372_s28  }
 0x279   : > { %s954_s3 = sand.u32 1, %s2375_s8  }
 0x27a   : > { %s955_s14 = scalar_lea.sflag [#allocation15], %s954_s3 }
 0x27b   : > { %1697 = dma.done.wait (!%p1316_p9), %s955_s14, 1024  }
 0x27c   : > { %1699 = vsyncadd (!%p1316_p9), %s955_s14, 4294966272  ;;  %s36_s22 = sadd.s32 1, %s2372_s28   ;;  %s2376_s26 = sld [smem:[#allocation30_spill]] }
 0x27d   : > { %p33_p7 = scmp.ge.s32.totalorder %s36_s22, 4   ;;  %s2377_s20 = sld [smem:[#allocation25_spill]] }
 0x27e   : > { %s2378_s21 = sld [smem:[#allocation28_spill]]  ;;  %s2379_s17 = smov %s1706_s18 }
 0x27f   : > { %s2380_s18 = smov %s1710_s19  ;;  %35 = sbr.rel (!%p33_p7) target bundleno = 20 (0x14), region = 178 }
 0x282   : > { %s2381_s19 = smov %s2376_s26 }
 0x286   :  { %969 = vsyncpa [#allocation3], 1 }
 0x287   :  { %971 = vsyncpa [#allocation3 + $0x1], 1 }
 0x288   :  { %972 = vsyncpa [#allocation6], 1 }
 0x289   :  { %974 = vsyncpa [#allocation6 + $0x1], 1 }
 0x28a   :  { %975 = vsyncpa [#allocation9], 1 }
 0x28b   :  { %976 = vsyncpa [#allocation12], 1 }
 0x28c   :  { %977 = vsyncpa [#allocation4], 1 }
 0x28d   :  { %979 = vsyncpa [#allocation4 + $0x1], 1 }
 0x28e   :  { %980 = vsyncpa [#allocation15], 1 }
 0x28f   :  { %982 = vsyncpa [#allocation15 + $0x1], 1 }

</bundles_post_ra>
